<compile_context>
chip_gen: v5e
topology: v5e:2x2
jax: 0.10.0
libtpu: 0.0.40
codegen_flags: <defaults>
</compile_context>

<pallas_src>
import functools

import jax
import jax.numpy as jnp
from jax import lax
from jax.experimental import pallas as pl
from jax.experimental.pallas import tpu as pltpu


def make_positional_encodings(seq_len: int, d_model: int, dtype=jnp.float32):
    """Reproduces the PyTorch buffer exactly:
       even dims -> cos(angle), odd dims -> sin(angle),
       angle[t, d] = t / 10000 ** (2 * d / d_model)."""
    t = jnp.arange(seq_len, dtype=jnp.float32).reshape(-1, 1)   # (S, 1)
    d = jnp.arange(d_model, dtype=jnp.float32).reshape(1, -1)   # (1, D)
    angles = t / jnp.power(10000.0, 2.0 * d / float(d_model))   # (S, D)
    even = (jnp.arange(d_model) % 2 == 0)[None, :]
    enc = jnp.where(even, jnp.cos(angles), jnp.sin(angles))     # (S, D)
    return enc[None].astype(dtype)                              # (1, S, D)


def _splitmix32(v):
    # Integer mixing (splitmix32-style): pure uint32 VPU ops. Fallback PRNG only.
    v = v ^ (v >> jnp.uint32(16))
    v = v * jnp.uint32(0x7FEB352D)
    v = v ^ (v >> jnp.uint32(15))
    v = v * jnp.uint32(0x846CA68B)
    v = v ^ (v >> jnp.uint32(16))
    return v


def _pe_dropout_kernel(seed_ref, x_ref, enc_ref, o_ref, *,
                       n_cols_total, rows_per_block, col_tile,
                       keep_threshold, scale, apply_dropout, use_hw_prng):
    # x_ref/o_ref: (1, R, TC) block; enc_ref: (1, E, TC) with E in {1, R} (broadcast add).
    y = x_ref[...] + enc_ref[...]
    if apply_dropout:
        if use_hw_prng:
            # Hardware PRNG: bit generation off the VALU (keeps the kernel HBM-bound
            # in training mode on v6e/v7x). Unique stream per tile via the tile id.
            tile_id = pl.program_id(1) * pl.num_programs(0) + pl.program_id(0)
            pltpu.prng_seed(seed_ref[0] + (tile_id + jnp.int32(1)) * jnp.int32(7919))
            bits = pltpu.bitcast(pltpu.prng_random_bits(y.shape), jnp.uint32)
        else:
            # Fallback: deterministic counter hash of the GLOBAL element index
            # (tiling-invariant). TODO(synk): the linear index wraps for > 2^32
            # elements; fine for caption-model shapes, use a 2-word counter otherwise.
            row_off = (pl.program_id(1) * rows_per_block).astype(jnp.uint32)
            col_off = (pl.program_id(0) * col_tile).astype(jnp.uint32)
            rows = lax.broadcasted_iota(jnp.uint32, y.shape, 1) + row_off
            cols = lax.broadcasted_iota(jnp.uint32, y.shape, 2) + col_off
            lin = rows * jnp.uint32(n_cols_total) + cols
            seed = seed_ref[0].astype(jnp.uint32)
            bits = _splitmix32(lin + seed * jnp.uint32(0x9E3779B9))
        # Integer-threshold compare; drop iff bits < round(p * 2^32).
        keep = bits >= jnp.uint32(keep_threshold)
        y = jnp.where(keep, y, jnp.zeros_like(y))
        # Keep the 1/(1-p) rescale in f32; cast once at the final store (bf16-friendly).
        y = y.astype(jnp.float32) * jnp.float32(scale)
    o_ref[...] = y.astype(o_ref.dtype)


# None = unknown, True = hardware PRNG lowers/runs, False = use the hash fallback.
_HW_PRNG_STATE = None

_MIB = 1024 * 1024


def _vmem_budget(budget, limit):
    """Per-chip live-VMEM budget for the pipeline buffers + compiler scoped limit."""
    cap = None
    try:
        info = pltpu.get_tpu_info()
        cap = int(getattr(info, "vmem_capacity_bytes", 0)) or None
    except Exception:
        cap = None
    if cap is None:
        cap = 64 * _MIB                    # conservative: v7x per-core size, safe everywhere
    if budget is None:
        budget = min(int(cap * 0.4), 48 * _MIB)   # v5e/v6e ~48 MiB, v7x ~25 MiB
    if limit is None:
        limit = min(int(cap * 0.6), 64 * _MIB)
    limit = max(int(limit), int(budget) + 4 * _MIB)
    return int(budget), int(limit)


def _pick_fold(B, S, D):
    """For B < 8: divisor f of S so x is viewed as (B, f, (S//f)*D) with better
    sublane utilization and a lane-dense (multiple-of-128) column count."""
    if B >= 8:
        return None

    def subl_util(r):
        return r / (8.0 * ((r + 7) // 8))

    best_f, best_u = None, subl_util(B)
    for f in range(2, S + 1):
        if S % f:
            continue
        C = (S // f) * D
        if C < 128 or C % 128:
            continue
        u = subl_util(f)
        if u > best_u + 1e-9:
            best_f, best_u = f, u
    return best_f


def positional_encodings_forward(x, enc, p_dropout, *, training=True, seed=0,
                                 use_hw_prng=None,
                                 vmem_budget_bytes=None, vmem_limit_bytes=None):
    """x: (B, S, D); enc: (1, S, D). Returns x + enc, with inverted dropout if training."""
    global _HW_PRNG_STATE
    B, S, D = x.shape
    dtype = x.dtype
    itemsize = jnp.dtype(dtype).itemsize
    budget, limit = _vmem_budget(vmem_budget_bytes, vmem_limit_bytes)

    # ---- layout: lane-dense 3D views -----------------------------------------
    fold_f = _pick_fold(B, S, D)
    if fold_f is None:
        # Main path: batch rows on the sublane axis, (S*D) flattened onto lanes.
        C_total = S * D
        x3 = x.reshape(1, B, C_total)
        enc3 = enc.reshape(1, 1, C_total)
        enc_rows = 1
        TBr = B if B <= 128 else 128           # row (sublane) tile
        n_row = pl.cdiv(B, TBr)
        x_map = lambda j, i, s: (0, i, j)
    else:
        # Small-batch fold: one batch element per block, f sequence rows on sublanes.
        f = fold_f
        C_total = (S // f) * D
        x3 = x.reshape(B, f, C_total)
        enc3 = enc.reshape(1, f, C_total)
        enc_rows = f
        TBr = f
        n_row = B
        x_map = lambda j, i, s: (i, 0, j)
    enc_map = lambda j, i, s: (0, 0, j)

    if enc3.dtype != dtype:
        # TODO(synk): pre-cast the encoding buffer to the activation dtype at
        # module-init time (like register_buffer) to avoid this per-call cast.
        enc3 = enc3.astype(dtype)

    # ---- column tile from the live-VMEM model ---------------------------------
    # live bytes/step ~= TN * (2 x-bufs + 2 out-bufs + 2 enc-bufs) * itemsize,
    # with rows padded to the 8-sublane granule.
    rb_pad = ((TBr + 7) // 8) * 8
    er_pad = ((enc_rows + 7) // 8) * 8
    max_cols = max(128, budget // ((4 * rb_pad + 2 * er_pad) * itemsize))
    TN = C_total if C_total <= max_cols else (max_cols // 128) * 128
    n_col = pl.cdiv(C_total, TN)

    # ---- guarantee >= 2 blocks so v7x megacore can shard across its 2 TCs -----
    if n_col == 1 and n_row == 1 and C_total >= 256:
        TN = pl.cdiv(pl.cdiv(C_total, 2), 128) * 128
        n_col = pl.cdiv(C_total, TN)

    # ---- dropout parameters ----------------------------------------------------
    apply_dropout = bool(training) and float(p_dropout) > 0.0
    keep_threshold = min(int(round(float(p_dropout) * 2.0 ** 32)), 2 ** 32 - 1)
    scale = (1.0 / (1.0 - float(p_dropout))) if apply_dropout else 1.0

    # Advisory cost: strictly memory-bound elementwise op.
    cost = pl.CostEstimate(
        flops=int(B * S * D * (3 if apply_dropout else 1)),
        transcendentals=0,
        bytes_accessed=int((2 * B * S * D + S * D) * itemsize))

    seeds = jnp.asarray([seed], dtype=jnp.int32)

    def _call(use_hw):
        kernel = functools.partial(
            _pe_dropout_kernel,
            n_cols_total=C_total, rows_per_block=TBr, col_tile=TN,
            keep_threshold=keep_threshold, scale=scale,
            apply_dropout=apply_dropout, use_hw_prng=use_hw)
        grid_spec = pltpu.PrefetchScalarGridSpec(
            num_scalar_prefetch=1,          # dropout seed lands in SMEM
            # Column tiles outermost: the broadcast encoding block (index (0,0,j))
            # stays resident across the inner row/batch loop.
            grid=(n_col, n_row),
            in_specs=[
                pl.BlockSpec((1, TBr, TN), x_map),          # x
                pl.BlockSpec((1, enc_rows, TN), enc_map),   # enc (broadcast)
            ],
            out_specs=pl.BlockSpec((1, TBr, TN), x_map),
        )
        return pl.pallas_call(
            kernel,
            out_shape=jax.ShapeDtypeStruct(x3.shape, dtype),
            grid_spec=grid_spec,
            compiler_params=pltpu.CompilerParams(
                dimension_semantics=("parallel", "parallel"),
                vmem_limit_bytes=limit),
            cost_estimate=cost,
        )(seeds, x3, enc3)

    want_hw = apply_dropout and (use_hw_prng if use_hw_prng is not None
                                 else (_HW_PRNG_STATE is not False))
    if want_hw and use_hw_prng is None and _HW_PRNG_STATE is not True:
        # First training-mode call: try the hardware PRNG, fall back to the
        # splitmix32 counter hash if it fails to lower/run on this backend.
        try:
            out3 = _call(True)
            jax.block_until_ready(out3)
            _HW_PRNG_STATE = True
        except Exception:
            _HW_PRNG_STATE = False
            out3 = _call(False)
    else:
        out3 = _call(bool(want_hw))
    return out3.reshape(B, S, D)


if __name__ == "__main__":
    key = jax.random.PRNGKey(0)
    k1, k2 = jax.random.split(key)
    p_dropout = 0.3   # dropout used by CaptionDecoder's PositionalEncodings

    # --- main path: batch=2, seq=8, hidden=32 --------------------------------
    B, S, D = 2, 8, 32
    x = jax.random.normal(k1, (B, S, D), dtype=jnp.float32)
    enc = make_positional_encodings(S, D)          # deterministic "buffer" init

    # Eval mode (dropout = identity): must match x + enc exactly.
    y_eval = jax.block_until_ready(
        positional_encodings_forward(x, enc, p_dropout, training=False))
    ref = x + enc
    assert y_eval.shape == (B, S, D) and y_eval.dtype == x.dtype
    assert jnp.allclose(y_eval, ref, atol=1e-6), "eval-mode mismatch"

    # Training mode: kept elements equal (x + enc) / (1 - p); dropped are exactly 0.
    # TODO(synk): PyTorch's dropout RNG stream is not bit-reproducible; a TPU PRNG
    # (or counter-hash fallback) stream is used instead.
    y_train = jax.block_until_ready(
        positional_encodings_forward(x, enc, p_dropout, training=True, seed=1234))
    scaled = ref / (1.0 - p_dropout)
    kept = y_train != 0   # test-only heuristic (an exact-zero x+enc would look dropped)
    assert jnp.allclose(jnp.where(kept, y_train, scaled), scaled, atol=1e-5), \
        "training-mode dropout scaling mismatch"
    assert bool(jnp.any(kept)) and bool(jnp.any(~kept)), "dropout mask degenerate"

    # --- small-batch fold path: batch=2, seq=12, hidden=128 -------------------
    B2, S2, D2 = 2, 12, 128
    x2 = jax.random.normal(k2, (B2, S2, D2), dtype=jnp.float32)
    enc2 = make_positional_encodings(S2, D2)
    y2 = jax.block_until_ready(
        positional_encodings_forward(x2, enc2, p_dropout, training=False))
    assert jnp.allclose(y2, x2 + enc2, atol=1e-6), "fold-path eval mismatch"

    print("KERNEL_OK")
</pallas_src>

<mosaic_0001>
module attributes {stable_mosaic.version = 11 : i64} {
  func.func @_pe_dropout_kernel(%arg0: i32, %arg1: i32, %arg2: memref<1xi32, #tpu.memory_space<smem>>, %arg3: memref<1x2x128xf32, #tpu.memory_space<vmem>>, %arg4: memref<1x1x128xf32, #tpu.memory_space<vmem>>, %arg5: memref<1x2x128xf32, #tpu.memory_space<vmem>>) attributes {dimension_semantics = [#tpu.dimension_semantics<parallel>, #tpu.dimension_semantics<parallel>], iteration_bounds = array<i64: 2, 1>, scalar_prefetch = 1 : i64, scratch_operands = 0 : i64, tpu.core_type = #tpu.core_type<tc>, window_params = [{transform_indices = @transform_0, window_bounds = array<i64: 1, 2, 128>}, {transform_indices = @transform_1, window_bounds = array<i64: 1, 1, 128>}, {transform_indices = @transform_2, window_bounds = array<i64: 1, 2, 128>}]} {
    %c0 = arith.constant 0 : index
    %c0_0 = arith.constant 0 : index
    %c0_1 = arith.constant 0 : index
    %0 = vector.load %arg3[%c0, %c0_0, %c0_1] : memref<1x2x128xf32, #tpu.memory_space<vmem>>, vector<1x2x128xf32>
    %c0_2 = arith.constant 0 : index
    %c0_3 = arith.constant 0 : index
    %c0_4 = arith.constant 0 : index
    %1 = vector.load %arg4[%c0_2, %c0_3, %c0_4] : memref<1x1x128xf32, #tpu.memory_space<vmem>>, vector<1x1x128xf32>
    %2 = vector.broadcast %1 : vector<1x1x128xf32> to vector<1x2x128xf32>
    %3 = arith.addf %0, %2 : vector<1x2x128xf32>
    %c0_5 = arith.constant 0 : index
    %c0_6 = arith.constant 0 : index
    %c0_7 = arith.constant 0 : index
    %4 = vector.load %arg5[%c0_5, %c0_6, %c0_7] : memref<1x2x128xf32, #tpu.memory_space<vmem>>, vector<1x2x128xf32>
    tpu.vector_store %arg5[%c0_5, %c0_6, %c0_7], %3 {strides = array<i32>} : memref<1x2x128xf32, #tpu.memory_space<vmem>>, vector<1x2x128xf32>,
    return
  }
  func.func @transform_0(%arg0: i32, %arg1: i32, %arg2: memref<1xi32, #tpu.memory_space<smem>>) -> (i32, i32, i32) {
    %c0_i32 = arith.constant 0 : i32
    %c0_i32_0 = arith.constant 0 : i32
    return %c0_i32, %arg1, %arg0 : i32, i32, i32
  }
  func.func @transform_1(%arg0: i32, %arg1: i32, %arg2: memref<1xi32, #tpu.memory_space<smem>>) -> (i32, i32, i32) {
    %c0_i32 = arith.constant 0 : i32
    %c0_i32_0 = arith.constant 0 : i32
    %c0_i32_1 = arith.constant 0 : i32
    return %c0_i32, %c0_i32_0, %arg0 : i32, i32, i32
  }
  func.func @transform_2(%arg0: i32, %arg1: i32, %arg2: memref<1xi32, #tpu.memory_space<smem>>) -> (i32, i32, i32) {
    %c0_i32 = arith.constant 0 : i32
    %c0_i32_0 = arith.constant 0 : i32
    return %c0_i32, %arg1, %arg0 : i32, i32, i32
  }
}

</mosaic_0001>

<bundles_post_ra>
// kernel: tpu_custom_call.1
= control target key start
LH: loop header
LB: loop body
LE: loop exit
PB: predicated region body
PF: predicated region fallthrough
CT: control target
= control target key end

     0   :  { %9 = vsyncpa [#allocation5], 0  ;;  %s646_s0 = inlined_call_operand.<no memory space> [shape: s32[1], index: 0, kind: input, shape index: {}]   ;;  %s647_s1 = inlined_call_operand.hbm [shape: f32[1,2,256], index: 1, kind: input, shape index: {}]   ;;  %s648_s2 = inlined_call_operand.vmem [shape: f32[1,1,256], index: 2, kind: input, shape index: {}]   ;;  %s649_s3 = inlined_call_operand.hbm [shape: f32[1,2,256], index: 3, kind: output, shape index: {}]  }
   0x1   :  { %11 = vsyncpa [#allocation5 + $0x1], 0 }
   0x2   :  { %12 = vsyncpa [#allocation6], 0 }
   0x3   :  { %14 = vsyncpa [#allocation6 + $0x1], 0  ;;  %s521_s12 = smov 0   ;;  %s523_s13 = smov 0  }
   0x4   :  { %s525_s14 = smov 0   ;;  %s527_s0 = smov 0  }
   0x5   :  { %s529_s15 = smov 0   ;;  %s531_s16 = smov 0  }
   0x6 LB: > { %s311_s17 = sadd.s32 4294967295, %s499_s16   ;;  %s312_s18 = sadd.s32 4294967294, %s499_s16   ;;  %s499_s16 = sphi %s531_s16, %s20_s16   ;;  %s495_s15 = sphi %s529_s15, %s658_s15   ;;  %s491_s0 = sphi %s527_s0, %s657_s0   ;;  %s487_s14 = sphi %s525_s14, %s656_s14   ;;  %s483_s13 = sphi %s523_s13, %s655_s13   ;;  %s479_s12 = sphi %s521_s12, %s654_s12  }
   0x7   : > { %s32_s19 = sadd.s32 1, %s495_s15  ;;  %s41_s20 = sadd.s32 1, %s487_s14 }
   0x8   : > { %p34_p0 = scmp.ge.s32.totalorder %s32_s19, 2  ;;  %p48_p1 = scmp.ne.s32.totalorder %s487_s14, %s483_s13 }
   0x9   : > { %p49_p2 = scmp.eq.s32.totalorder %s499_s16, 0  ;;  %p54_p3 = scmp.ne.s32.totalorder %s483_s13, %s479_s12 }
   0xa   : > { %s660_s19 = smov (%p34_p0, %s32_s19), 0  ;;  %p55_p5 = scmp.eq.s32.totalorder %s311_s17, 0 }
   0xb   : > { %p562_p4 = por %p49_p2, %p48_p1  ;;  %s37_s22 = ssub.s32 %s495_s15, %s660_s19 }
   0xc   : > { %p106_p6 = scmp.eq.s32.totalorder %s311_s17, 1  ;;  %p39_p7 = scmp.eq.s32.totalorder %s37_s22, 0 }
   0xd   : > { %p568_p8 = por %p55_p5, %p54_p3  ;;  %p112_p10 = scmp.eq.s32.totalorder %s312_s18, 1 }
   0xe   : > { %p572_p9 = por %p106_p6, %p48_p1  ;;  %p314_p12 = scmp.ge.s32.totalorder %s499_s16, 2 }
   0xf   : > { %s577_s25 = scalar_select %p39_p7, %s487_s14, %s41_s20  }
  0x10   : > { %p579_p11 = por %p112_p10, %p54_p3  ;;  %p336_p13 = scmp.lt.s32.totalorder %s499_s16, 2 }
  0x11   : > { %s132_s27 = sand.u32 1, %s487_s14   ;;  %s316_s29 = sshll.u32 %s495_s15, 1 }
  0x12   : > { %s315_s28 = sshll.u32 %s132_s27, 1  ;;  %s142_s5 = scalar_lea.hbm %s647_s1, %s316_s29 }
  0x13   : > { %s136_s6 = scalar_lea.vmem [#allocation4], %s315_s28  ;;  %s144_s8 = sshll.u32 %s142_s5, 4  ;;  %s145_s8 = int_to_ptr.hbm [resolvable:$true] %s144_s8 }
  0x14   : > { %s146_s7 = sshll.u32 %s136_s6, 4  ;;  %p329_p0 = pnand %p336_p13, %p562_p4  ;;  %s147_s7 = int_to_ptr.vmem [resolvable:$true] %s146_s7 }
  0x15   : > { %p317_p1 = scmp.ge.s32.totalorder %s499_s16, 1  ;;  %p157_p2 = scmp.lt.s32.totalorder %s499_s16, 3 }
  0x16   : > { %s133_s9 = scalar_lea.sflag [#allocation5], %s132_s27 }
  0x17   : > { %331 = dma.hbm_to_vmem [thread:$0]  (!%p329_p0), %s145_s8, 32, %s147_s7, %s133_s9  }
  0x18   : > { %p158_p3 = pnand %p317_p1, %p157_p2 }
  0x19   : > { %s595_s10 = sand.u32 (!%p158_p3), 1, %s483_s13  }
  0x1a   : > { %161 = sbr.rel (%p158_p3) target bundleno = 49 (0x31), region = 28  ;;  %s318_s11 = sshll.u32 (!%p158_p3), %s595_s10, 1 }
  0x1b   : > { %s164_s17 = scalar_lea.sflag (!%p158_p3), [#allocation5], %s595_s10  ;;  %s167_s18 = scalar_lea.vmem (!%p158_p3), [#allocation4], %s318_s11 }
  0x1f   : > { %470 = dma.done.wait (%p568_p8), %s164_s17, 32  }
  0x20   : > { %472 = vsyncadd (%p568_p8), %s164_s17, 4294967264  ;;  %p192_p4 = scmp.lt.s32.totalorder %s491_s0, 1  ;;  %s321_s21 = sshll.u32 %s491_s0, 1  ;;  %v195_v0 = vld [vmem:[%s167_s18] sm:$0x3] }
  0x21   : > { %s215_s4 = scalar_lea.hbm %s649_s3, %s321_s21  ;;  %s191_s5 = scalar_lea.vmem [#allocation7], %s318_s11 }
  0x22   : > { %s193_s20 = scalar_select %p192_p4, %s491_s0, 1 }
  0x23   : > { %s217_s6 = sshll.u32 %s191_s5, 4  ;;  %s219_s23 = sshll.u32 %s215_s4, 4  ;;  %s218_s6 = int_to_ptr.vmem [resolvable:$true] %s217_s6  ;;  %s220_s23 = int_to_ptr.hbm [resolvable:$true] %s219_s23 }
  0x24   : > { %s194_s28 = scalar_lea.vmem %s648_s2, %s193_s20  ;;  %s203_s7 = scalar_lea.sflag [#allocation6], %s595_s10 }
  0x25   : > { %v386_v1 = vld [vmem:[%s194_s28] ss:$0 sm:$0xff]  ;;  %s431_s0 = sshra.s32 %s220_s23, 4  ;;  %s437_s11 = scalar_lea.hbm %s649_s3, 4  ;;  %s432_s0 = int_to_ptr.hbm [resolvable:$true] %s431_s0 }
  0x26   : > { %v200_v2 = vadd.f32 %v386_v1, %v195_v0  ;;  %s433_s8 = scalar_lea.hbm %s432_s0, 2  ;;  %p438_p8 = scmp.lt.s32.totalorder %s432_s0, %s649_s3 }
  0x27   : > { %p434_p5 = scmp.ne.s32.totalorder %s432_s0, %s433_s8  ;;  %p439_p10 = scmp.lt.s32.totalorder %s437_s11, %s433_s8 }
  0x28   : > { %201 = vst [vmem:[%s191_s5] sm:$0x3] %v200_v2 }
  0x29   : > { %p435_p6 = pnand %p434_p5, %p572_p9  ;;  %p440_p13 = por %p439_p10, %p438_p8 }
  0x2b   : > { %p436_p7 = pneg %p435_p6 }
  0x2d   : > { %p441_p0 = pnand %p440_p13, %p436_p7 }
  0x2f   : > { %444 = shalt.err (!%p441_p0)
}
  0x30   : > { %326 = dma.vmem_to_hbm [thread:$0]  (%p572_p9), %s218_s6, 32, %s220_s23, %s203_s7  }
  0x31 PF: > { %s231_s10 = sand.u32 1, %s479_s12   ;;  %p333_p1 = pnand %p314_p12, %p579_p11 }
  0x32   : > { %s232_s18 = scalar_lea.sflag [#allocation6], %s231_s10 }
  0x33   : > { %p334_p2 = pneg %p333_p1 }
  0x35   : > { %474 = dma.done.wait (%p334_p2), %s232_s18, 32  }
  0x36   : > { %476 = vsyncadd (%p334_p2), %s232_s18, 4294967264  ;;  %s20_s16 = sadd.s32 1, %s499_s16   ;;  %s654_s12 = smov %s483_s13 }
  0x37   : > { %p17_p3 = scmp.ge.s32.totalorder %s20_s16, 4   ;;  %s655_s13 = smov %s487_s14 }
  0x38   : > { %s656_s14 = smov %s577_s25  ;;  %s657_s0 = smov %s495_s15 }
  0x39   : > { %s658_s15 = smov %s660_s19  ;;  %19 = sbr.rel (!%p17_p3) target bundleno = 6 (0x6), region = 76 }
  0x3e   :  { %238 = vsyncpa [#allocation5], 1 }
  0x3f   :  { %240 = vsyncpa [#allocation5 + $0x1], 1 }
  0x40   :  { %241 = vsyncpa [#allocation6], 1 }
  0x41   :  { %243 = vsyncpa [#allocation6 + $0x1], 1 }

</bundles_post_ra>
